<compile_context>
chip_gen: v7x
topology: tpu7x:2x2x1
jax: 0.10.0
libtpu: 0.0.40
codegen_flags: <defaults>
</compile_context>

<pallas_src>
import jax
import jax.numpy as jnp
from jax.experimental import pallas as pl
from jax.experimental.pallas import tpu as pltpu


def _round_up(n: int, m: int) -> int:
    return ((n + m - 1) // m) * m


def _num_tensorcores_per_chip() -> int:
    """2 TensorCores per chip on v4 / v5p / v7x, 1 on v5e / v6e (defensive default 1)."""
    try:
        kind = jax.devices()[0].device_kind.lower()
    except Exception:  # pragma: no cover - defensive
        return 1
    if ("v7" in kind) or ("v5p" in kind) or ("v4" in kind):
        return 2
    return 1


def _const_index_map(ndim: int):
    def imap(i):
        return (0,) * ndim
    return imap


# ---------------------------------------------------------------------------
# Fused kernel: first linear -> n_mid x (relu(linear) + residual) -> last linear
# ---------------------------------------------------------------------------

def _make_qnet_kernel(n_mid: int):
    def kernel(*refs):
        if n_mid > 0:
            x_ref, wf_ref, bf_ref, wm_ref, bm_ref, wl_ref, bl_ref, o_ref = refs
        else:
            x_ref, wf_ref, bf_ref, wl_ref, bl_ref, o_ref = refs

        # layers[0]: plain linear (bf16 MXU operands, f32 accumulate, f32 bias)
        h = jnp.dot(x_ref[...].astype(jnp.bfloat16), wf_ref[...],
                    preferred_element_type=jnp.float32) + bf_ref[...]

        # Middle layers, statically unrolled:  h_{l+1} = relu(h_l @ W_l + b_l) + h_l
        # (elementwise path kept f32 — v5e has no bf16 VPU).
        for l in range(n_mid):
            y = jnp.dot(h.astype(jnp.bfloat16), wm_ref[l],
                        preferred_element_type=jnp.float32) + bm_ref[l]
            h = jnp.maximum(y, 0.0) + h

        # layers[-1]: plain linear; Fout-wide (possibly masked) store.
        out = jnp.dot(h.astype(jnp.bfloat16), wl_ref[...],
                      preferred_element_type=jnp.float32) + bl_ref[...]
        o_ref[...] = out.astype(o_ref.dtype)

    return kernel


# ---------------------------------------------------------------------------
# Wrapper
# ---------------------------------------------------------------------------

def qnetwork_forward(x, params, *, batch_tile=None, single_buffer_weights=False):
    """Fused forward pass.

    params = (w_first, b_first, w_mid, b_mid, w_last, b_last); weights are
    (in, out) bf16, biases are (1, out) f32, w_mid is (L, H, H), b_mid (L, 1, H).
    """
    w_first, b_first, w_mid, b_mid, w_last, b_last = params
    B, Fin = x.shape
    H = w_first.shape[1]
    Fout = w_last.shape[1]
    n_mid = w_mid.shape[0]

    # ---- batch tiling (the only dimension that is ever padded) -------------
    if batch_tile is None:
        if _num_tensorcores_per_chip() <= 1:
            # v5e / v6e: single TC -> one grid step.  Cap at 256 rows so the
            # f32 h + y working set stays within the vreg budget.
            bt = min(_round_up(B, 8), 256)
        else:
            # v4 / v5p / v7x: split the batch so both TensorCores get tiles;
            # 128-row tiles fill the MXU.
            bt = min(128, _round_up(-(-B // 2), 8))
    else:
        bt = min(_round_up(batch_tile, 8), _round_up(B, 8))
    B_p = _round_up(B, bt)

    # Row padding is exact: padded rows are sliced off below.
    x_in = x if B_p == B else jnp.zeros((B_p, Fin), x.dtype).at[:B, :].set(x)

    # ---- BlockSpecs ---------------------------------------------------------
    # Feature dims are NOT padded: blocks over Fin / Fout use the full array
    # extent, so there is no padded HBM traffic and no wrapper pad/slice ops.
    def const_spec(shape):
        kwargs = {}
        if single_buffer_weights:
            # Constant-index blocks need no double-buffering; halves weight
            # VMEM for scaled configs (matters on v7x's 64 MiB VMEM).
            kwargs["pipeline_mode"] = pl.Buffered(1)
        return pl.BlockSpec(shape, _const_index_map(len(shape)), **kwargs)

    in_specs = [
        pl.BlockSpec((bt, Fin), lambda i: (i, 0)),   # activations: tiled on batch
        const_spec((Fin, H)),                        # weights: VMEM-resident full blocks
        const_spec((1, H)),
    ]
    args = [x_in, w_first, b_first]
    if n_mid > 0:
        # Whole (L, H, H) weight stack as one VMEM block — fine at these sizes.
        # TODO(synk): for scaled configs (e.g. H >= 2048 on v7x's 64 MiB VMEM)
        # add an 'arbitrary' grid axis over the layer (or output-N) dim, keep h
        # in a VMEM scratch accumulator, and set vmem_limit_bytes explicitly.
        in_specs += [const_spec((n_mid, H, H)), const_spec((n_mid, 1, H))]
        args += [w_mid, b_mid]
    in_specs += [const_spec((H, Fout)), const_spec((1, Fout))]
    args += [w_last, b_last]

    flops = 2 * B_p * (Fin * H + n_mid * H * H + H * Fout)
    bytes_accessed = (
        int(x_in.size) * x_in.dtype.itemsize
        + sum(int(a.size) * a.dtype.itemsize
              for a in (w_first, b_first, w_mid, b_mid, w_last, b_last))
        + B_p * Fout * 4
    )

    out = pl.pallas_call(
        _make_qnet_kernel(n_mid),
        out_shape=jax.ShapeDtypeStruct((B_p, Fout), jnp.float32),
        grid=(B_p // bt,),
        in_specs=in_specs,
        out_specs=pl.BlockSpec((bt, Fout), lambda i: (i, 0)),
        compiler_params=pltpu.CompilerParams(
            dimension_semantics=("parallel",)),       # batch tiles shard across TCs
        cost_estimate=pl.CostEstimate(flops=flops, transcendentals=0,
                                      bytes_accessed=bytes_accessed),
    )(*args)

    return out if B_p == B else out[:B]


# ---------------------------------------------------------------------------
# Deterministic parameter init (mirrors nn.Linear's U(-1/sqrt(fan_in), +...))
# ---------------------------------------------------------------------------

def init_params(key, input_size, output_size, hidden_size, num_layers,
                weight_dtype=jnp.bfloat16):
    def linear_init(k, fan_in, fan_out):
        kw, kb = jax.random.split(k)
        bound = float(fan_in) ** -0.5
        w = jax.random.uniform(kw, (fan_in, fan_out), jnp.float32, -bound, bound)
        b = jax.random.uniform(kb, (1, fan_out), jnp.float32, -bound, bound)
        return w.astype(weight_dtype), b            # weights bf16, biases f32

    keys = jax.random.split(key, num_layers)
    w_first, b_first = linear_init(keys[0], input_size, hidden_size)

    n_mid = num_layers - 2
    w_mid_list, b_mid_list = [], []
    for i in range(n_mid):
        w, b = linear_init(keys[1 + i], hidden_size, hidden_size)
        w_mid_list.append(w)
        b_mid_list.append(b[None])                  # (1, 1, H)
    if n_mid > 0:
        w_mid = jnp.stack(w_mid_list, axis=0)        # (L, H, H)
        b_mid = jnp.concatenate(b_mid_list, axis=0)  # (L, 1, H)
    else:
        w_mid = jnp.zeros((0, hidden_size, hidden_size), weight_dtype)
        b_mid = jnp.zeros((0, 1, hidden_size), jnp.float32)

    w_last, b_last = linear_init(keys[-1], hidden_size, output_size)
    return (w_first, b_first, w_mid, b_mid, w_last, b_last)


def qnetwork_reference(x, params, mxu_dtype=jnp.float32):
    """Pure-JAX reference.  mxu_dtype=jnp.bfloat16 mimics the kernel's bf16 MXU
    operands (tight check); jnp.float32 matches the original module's f32 math."""
    w_first, b_first, w_mid, b_mid, w_last, b_last = params

    def mm(a, w):
        return jnp.dot(a.astype(mxu_dtype), w.astype(mxu_dtype),
                       preferred_element_type=jnp.float32)

    h = mm(x, w_first) + b_first
    for l in range(w_mid.shape[0]):
        h = jnp.maximum(mm(h, w_mid[l]) + b_mid[l], 0.0) + h
    return mm(h, w_last) + b_last


# ---------------------------------------------------------------------------
# Main
# ---------------------------------------------------------------------------

if __name__ == "__main__":
    # Small-but-MXU-friendly shapes: 128/256-row batch tiles fill the MXU height
    # and hidden is one (8,128)-aligned tile.  Same layer structure as the module
    # (1 input layer + 2 residual hidden layers + 1 output layer).
    B = 256
    INPUT_SIZE = 32
    HIDDEN_SIZE = 128
    OUTPUT_SIZE = 8
    NUM_LAYERS = 4

    key = jax.random.PRNGKey(0)
    k_x, k_p = jax.random.split(key)
    x = jax.random.normal(k_x, (B, INPUT_SIZE), jnp.float32)
    params = init_params(k_p, INPUT_SIZE, OUTPUT_SIZE, HIDDEN_SIZE, NUM_LAYERS)

    fwd = jax.jit(qnetwork_forward)        # single dispatch for the whole network
    out = jax.block_until_ready(fwd(x, params))
    assert out.shape == (B, OUTPUT_SIZE)

    # Tight check: same bf16-operand / f32-accumulate recipe as the kernel.
    ref_bf16 = qnetwork_reference(x, params, mxu_dtype=jnp.bfloat16)
    assert jnp.allclose(out, ref_bf16, atol=1e-2, rtol=1e-2), \
        float(jnp.max(jnp.abs(out - ref_bf16)))

    # Loose check: original module's all-f32 elementwise/matmul semantics
    # (difference bounded by the bf16 rounding of the MXU operands).
    ref_f32 = qnetwork_reference(x, params, mxu_dtype=jnp.float32)
    assert jnp.allclose(out, ref_f32, atol=5e-2, rtol=5e-2), \
        float(jnp.max(jnp.abs(out - ref_f32)))

    print("KERNEL_OK")
</pallas_src>

<mosaic_0001>
module attributes {stable_mosaic.version = 11 : i64} {
  func.func @kernel(%arg0: i32, %arg1: memref<256x32xf32, #tpu.memory_space<vmem>>, %arg2: memref<32x128xbf16, #tpu.memory_space<vmem>>, %arg3: memref<1x128xf32, #tpu.memory_space<vmem>>, %arg4: memref<2x128x128xbf16, #tpu.memory_space<vmem>>, %arg5: memref<2x1x128xf32, #tpu.memory_space<vmem>>, %arg6: memref<128x8xbf16, #tpu.memory_space<vmem>>, %arg7: memref<1x8xf32, #tpu.memory_space<vmem>>, %arg8: memref<256x8xf32, #tpu.memory_space<vmem>>) attributes {dimension_semantics = [#tpu.dimension_semantics<parallel>], iteration_bounds = array<i64: 1>, scalar_prefetch = 0 : i64, scratch_operands = 0 : i64, tpu.core_type = #tpu.core_type<tc>, window_params = [{transform_indices = @transform_0, window_bounds = array<i64: 256, 32>}, {pipeline_mode = #tpu.pipeline_mode<synchronous>, transform_indices = @transform_1, window_bounds = array<i64: 32, 128>}, {pipeline_mode = #tpu.pipeline_mode<synchronous>, transform_indices = @transform_2, window_bounds = array<i64: 1, 128>}, {pipeline_mode = #tpu.pipeline_mode<synchronous>, transform_indices = @transform_3, window_bounds = array<i64: 2, 128, 128>}, {pipeline_mode = #tpu.pipeline_mode<synchronous>, transform_indices = @transform_4, window_bounds = array<i64: 2, 1, 128>}, {pipeline_mode = #tpu.pipeline_mode<synchronous>, transform_indices = @transform_5, window_bounds = array<i64: 128, 8>}, {pipeline_mode = #tpu.pipeline_mode<synchronous>, transform_indices = @transform_6, window_bounds = array<i64: 1, 8>}, {transform_indices = @transform_7, window_bounds = array<i64: 256, 8>}]} {
    %c0 = arith.constant 0 : index
    %c0_0 = arith.constant 0 : index
    %0 = vector.load %arg1[%c0, %c0_0] : memref<256x32xf32, #tpu.memory_space<vmem>>, vector<256x32xf32>
    %1 = arith.truncf %0 : vector<256x32xf32> to vector<256x32xbf16>
    %c0_1 = arith.constant 0 : index
    %c0_2 = arith.constant 0 : index
    %2 = vector.load %arg2[%c0_1, %c0_2] : memref<32x128xbf16, #tpu.memory_space<vmem>>, vector<32x128xbf16>
    %cst = arith.constant dense<0.000000e+00> : vector<256x128xf32>
    %3 = tpu.matmul %1, %2, %cst {dimension_numbers = #tpu.dot_dimension_numbers<[1], [0], [0], [1], [0, 0, 1, 1], [], []>} : vector<256x32xbf16>, vector<32x128xbf16>, vector<256x128xf32> -> vector<256x128xf32>
    %c0_3 = arith.constant 0 : index
    %c0_4 = arith.constant 0 : index
    %4 = vector.load %arg3[%c0_3, %c0_4] : memref<1x128xf32, #tpu.memory_space<vmem>>, vector<1x128xf32>
    %5 = vector.broadcast %4 : vector<1x128xf32> to vector<256x128xf32>
    %6 = arith.addf %3, %5 : vector<256x128xf32>
    %7 = arith.truncf %6 : vector<256x128xf32> to vector<256x128xbf16>
    %c0_5 = arith.constant 0 : index
    %c0_6 = arith.constant 0 : index
    %c0_7 = arith.constant 0 : index
    %8 = vector.load %arg4[%c0_5, %c0_6, %c0_7] : memref<2x128x128xbf16, #tpu.memory_space<vmem>>, vector<1x128x128xbf16>
    %9 = vector.shape_cast %8 : vector<1x128x128xbf16> to vector<128x128xbf16>
    %cst_8 = arith.constant dense<0.000000e+00> : vector<256x128xf32>
    %10 = tpu.matmul %7, %9, %cst_8 {dimension_numbers = #tpu.dot_dimension_numbers<[1], [0], [0], [1], [0, 0, 1, 1], [], []>} : vector<256x128xbf16>, vector<128x128xbf16>, vector<256x128xf32> -> vector<256x128xf32>
    %c0_9 = arith.constant 0 : index
    %c0_10 = arith.constant 0 : index
    %c0_11 = arith.constant 0 : index
    %11 = vector.load %arg5[%c0_9, %c0_10, %c0_11] : memref<2x1x128xf32, #tpu.memory_space<vmem>>, vector<1x1x128xf32>
    %12 = vector.shape_cast %11 : vector<1x1x128xf32> to vector<1x128xf32>
    %13 = vector.broadcast %12 : vector<1x128xf32> to vector<256x128xf32>
    %14 = arith.addf %10, %13 : vector<256x128xf32>
    %cst_12 = arith.constant 0.000000e+00 : f32
    %15 = vector.broadcast %cst_12 : f32 to vector<256x128xf32>
    %16 = arith.maximumf %14, %15 : vector<256x128xf32>
    %17 = arith.addf %16, %6 : vector<256x128xf32>
    %18 = arith.truncf %17 : vector<256x128xf32> to vector<256x128xbf16>
    %c1 = arith.constant 1 : index
    %c0_13 = arith.constant 0 : index
    %c0_14 = arith.constant 0 : index
    %19 = vector.load %arg4[%c1, %c0_13, %c0_14] : memref<2x128x128xbf16, #tpu.memory_space<vmem>>, vector<1x128x128xbf16>
    %20 = vector.shape_cast %19 : vector<1x128x128xbf16> to vector<128x128xbf16>
    %cst_15 = arith.constant dense<0.000000e+00> : vector<256x128xf32>
    %21 = tpu.matmul %18, %20, %cst_15 {dimension_numbers = #tpu.dot_dimension_numbers<[1], [0], [0], [1], [0, 0, 1, 1], [], []>} : vector<256x128xbf16>, vector<128x128xbf16>, vector<256x128xf32> -> vector<256x128xf32>
    %c1_16 = arith.constant 1 : index
    %c0_17 = arith.constant 0 : index
    %c0_18 = arith.constant 0 : index
    %22 = vector.load %arg5[%c1_16, %c0_17, %c0_18] : memref<2x1x128xf32, #tpu.memory_space<vmem>>, vector<1x1x128xf32>
    %23 = vector.shape_cast %22 : vector<1x1x128xf32> to vector<1x128xf32>
    %24 = vector.broadcast %23 : vector<1x128xf32> to vector<256x128xf32>
    %25 = arith.addf %21, %24 : vector<256x128xf32>
    %cst_19 = arith.constant 0.000000e+00 : f32
    %26 = vector.broadcast %cst_19 : f32 to vector<256x128xf32>
    %27 = arith.maximumf %25, %26 : vector<256x128xf32>
    %28 = arith.addf %27, %17 : vector<256x128xf32>
    %29 = arith.truncf %28 : vector<256x128xf32> to vector<256x128xbf16>
    %c0_20 = arith.constant 0 : index
    %c0_21 = arith.constant 0 : index
    %30 = vector.load %arg6[%c0_20, %c0_21] : memref<128x8xbf16, #tpu.memory_space<vmem>>, vector<128x8xbf16>
    %cst_22 = arith.constant dense<0.000000e+00> : vector<256x8xf32>
    %31 = tpu.matmul %29, %30, %cst_22 {dimension_numbers = #tpu.dot_dimension_numbers<[1], [0], [0], [1], [0, 0, 1, 1], [], []>} : vector<256x128xbf16>, vector<128x8xbf16>, vector<256x8xf32> -> vector<256x8xf32>
    %c0_23 = arith.constant 0 : index
    %c0_24 = arith.constant 0 : index
    %32 = vector.load %arg7[%c0_23, %c0_24] : memref<1x8xf32, #tpu.memory_space<vmem>>, vector<1x8xf32>
    %33 = vector.broadcast %32 : vector<1x8xf32> to vector<256x8xf32>
    %34 = arith.addf %31, %33 : vector<256x8xf32>
    %c0_25 = arith.constant 0 : index
    %c0_26 = arith.constant 0 : index
    %35 = vector.load %arg8[%c0_25, %c0_26] : memref<256x8xf32, #tpu.memory_space<vmem>>, vector<256x8xf32>
    tpu.vector_store %arg8[%c0_25, %c0_26], %34 {strides = array<i32>} : memref<256x8xf32, #tpu.memory_space<vmem>>, vector<256x8xf32>,
    return
  }
  func.func @transform_0(%arg0: i32) -> (i32, i32) {
    %c0_i32 = arith.constant 0 : i32
    %c0_i32_0 = arith.constant 0 : i32
    return %arg0, %c0_i32 : i32, i32
  }
  func.func @transform_1(%arg0: i32) -> (i32, i32) {
    %c0_i32 = arith.constant 0 : i32
    %c0_i32_0 = arith.constant 0 : i32
    %c0_i32_1 = arith.constant 0 : i32
    return %c0_i32, %c0_i32_0 : i32, i32
  }
  func.func @transform_2(%arg0: i32) -> (i32, i32) {
    %c0_i32 = arith.constant 0 : i32
    %c0_i32_0 = arith.constant 0 : i32
    %c0_i32_1 = arith.constant 0 : i32
    return %c0_i32, %c0_i32_0 : i32, i32
  }
  func.func @transform_3(%arg0: i32) -> (i32, i32, i32) {
    %c0_i32 = arith.constant 0 : i32
    %c0_i32_0 = arith.constant 0 : i32
    %c0_i32_1 = arith.constant 0 : i32
    %c0_i32_2 = arith.constant 0 : i32
    return %c0_i32, %c0_i32_0, %c0_i32_1 : i32, i32, i32
  }
  func.func @transform_4(%arg0: i32) -> (i32, i32, i32) {
    %c0_i32 = arith.constant 0 : i32
    %c0_i32_0 = arith.constant 0 : i32
    %c0_i32_1 = arith.constant 0 : i32
    %c0_i32_2 = arith.constant 0 : i32
    return %c0_i32, %c0_i32_0, %c0_i32_1 : i32, i32, i32
  }
  func.func @transform_5(%arg0: i32) -> (i32, i32) {
    %c0_i32 = arith.constant 0 : i32
    %c0_i32_0 = arith.constant 0 : i32
    %c0_i32_1 = arith.constant 0 : i32
    return %c0_i32, %c0_i32_0 : i32, i32
  }
  func.func @transform_6(%arg0: i32) -> (i32, i32) {
    %c0_i32 = arith.constant 0 : i32
    %c0_i32_0 = arith.constant 0 : i32
    %c0_i32_1 = arith.constant 0 : i32
    return %c0_i32, %c0_i32_0 : i32, i32
  }
  func.func @transform_7(%arg0: i32) -> (i32, i32) {
    %c0_i32 = arith.constant 0 : i32
    %c0_i32_0 = arith.constant 0 : i32
    return %arg0, %c0_i32 : i32, i32
  }
}

</mosaic_0001>

<bundles_post_ra>
// kernel: qnetwork_forward.1
= control target key start
LH: loop header
LB: loop body
LE: loop exit
PB: predicated region body
PF: predicated region fallthrough
CT: control target
= control target key end

     0   :  { %vm98_vm0 = vcmask 261120   ;;  %vm1182_vm1 = vcmask 64512   ;;  %s2386_s1 = inlined_call_operand.vmem [shape: bf16[32,128], index: 1, kind: input, shape index: {}]   ;;  %s2387_s0 = inlined_call_operand.vmem [shape: f32[256,32], index: 0, kind: input, shape index: {}]   ;;  %s2388_s3 = inlined_call_operand.vmem [shape: bf16[2,128,128], index: 3, kind: input, shape index: {}]   ;;  %s2389_s2 = inlined_call_operand.vmem [shape: f32[1,128], index: 2, kind: input, shape index: {}]   ;;  %s2390_s5 = inlined_call_operand.vmem [shape: bf16[128,8], index: 5, kind: input, shape index: {}]   ;;  %s2391_s4 = inlined_call_operand.vmem [shape: f32[2,1,128], index: 4, kind: input, shape index: {}]   ;;  %s2392_s6 = inlined_call_operand.vmem [shape: f32[1,8], index: 6, kind: input, shape index: {}]   ;;  %s2393_s7 = inlined_call_operand.vmem [shape: f32[256,8], index: 7, kind: output, shape index: {}]  }
   0x1   :  { %v1568_v0 = vld [vmem:[%s2386_s1] sm:$0xff]   ;;  %v1569_v1 = vld [vmem:[%s2386_s1 + $0x8] sm:$0xff]   ;;  %v29_v5 = vld [vmem:[%s2387_s0 + $0x10] sm:$0xff] }
   0x2   :  { %1372 = vmatprep.subr.bf16.mxu0 %v1568_v0  ;;  %v27_v2 = vld [vmem:[%s2387_s0] sm:$0xff]  ;;  %v28_v3 = vld [vmem:[%s2387_s0 + $0x8] sm:$0xff]  ;;  %v30_v6 = vld [vmem:[%s2387_s0 + $0x18] sm:$0xff] }
   0x3   :  { %1373 = vmatpush3.bf16.msra.mxu0 %v1568_v0  ;;  %v59_v4 = vpack.c.bf16 %v28_v3, %v27_v2  ;;  %v31_v7 = vld [vmem:[%s2387_s0 + $0x20] sm:$0xff]  ;;  %v32_v8 = vld [vmem:[%s2387_s0 + $0x28] sm:$0xff]  ;;  %v60_v9 = vpack.c.bf16 %v30_v6, %v29_v5  ;;  %v33_v11 = vld [vmem:[%s2387_s0 + $0x30] sm:$0xff] }
   0x4   :  { %1374 = vmatprep.subr.bf16.mxu0 %v1569_v1  ;;  %v61_v10 = vpack.c.bf16 %v32_v8, %v31_v7  ;;  %v34_v12 = vld [vmem:[%s2387_s0 + $0x38] sm:$0xff]  ;;  %v35_v13 = vld [vmem:[%s2387_s0 + $0x40] sm:$0xff]  ;;  %v36_v14 = vld [vmem:[%s2387_s0 + $0x48] sm:$0xff] }
   0x5   :  { %1376 = vmatprep.mubr.msk.bf16.mxu0 %vm98_vm0, %v59_v4  ;;  %v1570_v15 = vld [vmem:[%s2388_s3] sm:$0xff]   ;;  %v62_v16 = vpack.c.bf16 %v34_v12, %v33_v11  ;;  %v1571_v17 = vld [vmem:[%s2388_s3 + $0x8] sm:$0xff]   ;;  %v63_v18 = vpack.c.bf16 %v36_v14, %v35_v13  ;;  %v37_v19 = vld [vmem:[%s2387_s0 + $0x50] sm:$0xff] }
   0x6   :  { %1408 = vmatprep.subr.bf16.mxu1 %v1570_v15  ;;  %v38_v20 = vld [vmem:[%s2387_s0 + $0x58] sm:$0xff]  ;;  %v1572_v21 = vld [vmem:[%s2388_s3 + $0x10] sm:$0xff]   ;;  %v39_v22 = vld [vmem:[%s2387_s0 + $0x60] sm:$0xff] }
   0x7   :  { %1375 = vmatpush3.bf16.msra.mxu0 %v1569_v1  ;;  %1409 = vmatpush3.bf16.msra.mxu1 %v1570_v15  ;;  %v40_v23 = vld [vmem:[%s2387_s0 + $0x68] sm:$0xff]  ;;  %v1573_v24 = vld [vmem:[%s2388_s3 + $0x18] sm:$0xff]   ;;  %v64_v25 = vpack.c.bf16 %v38_v20, %v37_v19  ;;  %v1574_v27 = vld [vmem:[%s2388_s3 + $0x20] sm:$0xff]  }
   0x8   :  { %1410 = vmatprep.subr.bf16.mxu1 %v1571_v17  ;;  %v65_v26 = vpack.c.bf16 %v40_v23, %v39_v22  ;;  %v41_v28 = vld [vmem:[%s2387_s0 + $0x70] sm:$0xff]  ;;  %v42_v29 = vld [vmem:[%s2387_s0 + $0x78] sm:$0xff]  ;;  %v43_v30 = vld [vmem:[%s2387_s0 + $0x80] sm:$0xff] }
   0x9   :  { %v44_v31 = vld [vmem:[%s2387_s0 + $0x88] sm:$0xff]  ;;  %v66_v33 = vpack.c.bf16 %v42_v29, %v41_v28  ;;  %v45_v35 = vld [vmem:[%s2387_s0 + $0x90] sm:$0xff]  ;;  %v46_v36 = vld [vmem:[%s2387_s0 + $0x98] sm:$0xff] }
   0xa   :  { %1377 = vmatmul.mubr.msk.bf16.vlgmr.msra.gmra.mrb[0].mxu0 %vm98_vm0, %v60_v9  ;;  %v1575_v32 = vld [vmem:[%s2388_s3 + $0x28] sm:$0xff]   ;;  %v67_v34 = vpack.c.bf16 %v44_v31, %v43_v30  ;;  %v47_v37 = vld [vmem:[%s2387_s0 + $0xa0] sm:$0xff]  ;;  %v68_v39 = vpack.c.bf16 %v46_v36, %v45_v35  ;;  %v49_v41 = vld [vmem:[%s2387_s0 + $0xb0] sm:$0xff] }
   0xb   :  { %1380 = vmatprep.mubr.msk.bf16.mxu0 %vm98_vm0, %v61_v10  ;;  %1411 = vmatpush3.bf16.msra.mxu1 %v1571_v17  ;;  %v48_v38 = vld [vmem:[%s2387_s0 + $0xa8] sm:$0xff]  ;;  %v50_v42 = vld [vmem:[%s2387_s0 + $0xb8] sm:$0xff]  ;;  %v51_v43 = vld [vmem:[%s2387_s0 + $0xc0] sm:$0xff] }
   0xc   :  { %1412 = vmatprep.subr.bf16.mxu1 %v1572_v21  ;;  %v69_v40 = vpack.c.bf16 %v48_v38, %v47_v37  ;;  %v52_v44 = vld [vmem:[%s2387_s0 + $0xc8] sm:$0xff]  ;;  %v70_v45 = vpack.c.bf16 %v50_v42, %v49_v41  ;;  %v53_v47 = vld [vmem:[%s2387_s0 + $0xd0] sm:$0xff]  ;;  %v54_v48 = vld [vmem:[%s2387_s0 + $0xd8] sm:$0xff] }
   0xd   :  { %v71_v46 = vpack.c.bf16 %v52_v44, %v51_v43  ;;  %v55_v49 = vld [vmem:[%s2387_s0 + $0xe0] sm:$0xff]  ;;  %v56_v50 = vld [vmem:[%s2387_s0 + $0xe8] sm:$0xff]  ;;  %v72_v51 = vpack.c.bf16 %v54_v48, %v53_v47  ;;  %v57_v53 = vld [vmem:[%s2387_s0 + $0xf0] sm:$0xff] }
   0xe   :  { %v73_v52 = vpack.c.bf16 %v56_v50, %v55_v49  ;;  %v58_v54 = vld [vmem:[%s2387_s0 + $0xf8] sm:$0xff]  ;;  %v1576_v56 = vld [vmem:[%s2388_s3 + $0x30] sm:$0xff]   ;;  %v1578_v58 = vld [vmem:[%s2388_s3 + $0x40] sm:$0xff]  }
   0xf   :  { %1413 = vmatpush3.bf16.msra.mxu1 %v1572_v21  ;;  %v74_v55 = vpack.c.bf16 %v58_v54, %v57_v53  ;;  %v1577_v57 = vld [vmem:[%s2388_s3 + $0x38] sm:$0xff]   ;;  %v1579_v59 = vld [vmem:[%s2388_s3 + $0x48] sm:$0xff]   ;;  %1456 = vmatprep.subr.bf16.mxu0 %v1578_v58  ;;  %v1580_v60 = vld [vmem:[%s2388_s3 + $0x50] sm:$0xff]  }
  0x10   :  { %1414 = vmatprep.subr.bf16.mxu1 %v1573_v24  ;;  %1457 = vmatpush3.bf16.msra.mxu0 %v1578_v58  ;;  %v1581_v61 = vld [vmem:[%s2388_s3 + $0x58] sm:$0xff]   ;;  %v1582_v62 = vld [vmem:[%s2388_s3 + $0x60] sm:$0xff]   ;;  %v1583_v63 = vld [vmem:[%s2388_s3 + $0x68] sm:$0xff]  }
  0x11   :  { %1458 = vmatprep.subr.bf16.mxu0 %v1579_v59  ;;  %v1584_v0 = vld [vmem:[%s2388_s3 + $0x70] sm:$0xff]   ;;  %v1800_v2 = vld [vmem:[%s2389_s2] ss:$0 sm:$0xff] }
  0x12   :  { %1381 = vmatmul.mubr.msk.bf16.gmra.mrb[4].mxu0 %vm98_vm0, %v62_v16 }
  0x13   :  { %1384 = vmatprep.mubr.msk.bf16.mxu0 %vm98_vm0, %v63_v18  ;;  %1415 = vmatpush3.bf16.msra.mxu1 %v1573_v24 }
  0x14   :  { %1416 = vmatprep.subr.bf16.mxu1 %v1574_v27  ;;  %1459 = vmatpush3.bf16.msra.mxu0 %v1579_v59 }
  0x15   :  { %1460 = vmatprep.subr.bf16.mxu0 %v1580_v60 }
  0x17   :  { %1417 = vmatpush3.bf16.msra.mxu1 %v1574_v27 }
  0x18   :  { %1418 = vmatprep.subr.bf16.mxu1 %v1575_v32  ;;  %1461 = vmatpush3.bf16.msra.mxu0 %v1580_v60 }
  0x19   :  { %1462 = vmatprep.subr.bf16.mxu0 %v1581_v61 }
  0x1a   :  { %1385 = vmatmul.mubr.msk.bf16.gmra.mrb[8].mxu0 %vm98_vm0, %v64_v25 }
  0x1b   :  { %1388 = vmatprep.mubr.msk.bf16.mxu0 %vm98_vm0, %v65_v26  ;;  %1419 = vmatpush3.bf16.msra.mxu1 %v1575_v32 }
  0x1c   :  { %1420 = vmatprep.subr.bf16.mxu1 %v1576_v56  ;;  %1463 = vmatpush3.bf16.msra.mxu0 %v1581_v61 }
  0x1d   :  { %1464 = vmatprep.subr.bf16.mxu0 %v1582_v62 }
  0x1f   :  { %1421 = vmatpush3.bf16.msra.mxu1 %v1576_v56 }
  0x20   :  { %1422 = vmatprep.subr.bf16.mxu1 %v1577_v57  ;;  %1465 = vmatpush3.bf16.msra.mxu0 %v1582_v62 }
  0x21   :  { %1466 = vmatprep.subr.bf16.mxu0 %v1583_v63 }
  0x22   :  { %1389 = vmatmul.mubr.msk.bf16.gmra.mrb[12].mxu0 %vm98_vm0, %v66_v33 }
  0x23   :  { %1392 = vmatprep.mubr.msk.bf16.mxu0 %vm98_vm0, %v67_v34  ;;  %1423 = vmatpush3.bf16.msra.mxu1 %v1577_v57 }
  0x24   :  { %1467 = vmatpush3.bf16.msra.mxu0 %v1583_v63 }
  0x25   :  { %1468 = vmatprep.subr.bf16.mxu0 %v1584_v0 }
  0x28   :  { %1469 = vmatpush3.bf16.msra.mxu0 %v1584_v0 }
  0x2a   :  { %1393 = vmatmul.mubr.msk.bf16.gmra.mrb[16].mxu0 %vm98_vm0, %v68_v39 }
  0x2b   :  { %1396 = vmatprep.mubr.msk.bf16.mxu0 %vm98_vm0, %v69_v40 }
  0x32   :  { %1397 = vmatmul.mubr.msk.bf16.gmra.mrb[20].mxu0 %vm98_vm0, %v70_v45 }
  0x33   :  { %1400 = vmatprep.mubr.msk.bf16.mxu0 %vm98_vm0, %v71_v46 }
  0x3a   :  { %1401 = vmatmul.mubr.msk.bf16.gmra.mrb[24].mxu0 %vm98_vm0, %v72_v51 }
  0x3b   :  { %1404 = vmatprep.mubr.msk.bf16.mxu0 %vm98_vm0, %v73_v52 }
  0x42   :  { %1405 = vmatmul.mubr.msk.bf16.gmra.mrb[28].mxu0 %vm98_vm0, %v74_v55 }
  0xdd   :  { %v1378_v1 = vpop.f32.mrb[0].mxu0 }
  0xde   :  { %v181_v3 = vpop.f32.mrb[1].mxu0  ;;  %v1812_v9 = vadd.f32 %v1378_v1, %v1800_v2 }
  0xdf   :  { %v1379_v4 = vpop.f32.mrb[2].mxu0  ;;  %v1806_v7 = vadd.f32 %v1800_v2, %v181_v3 }
  0xe0   :  { %v1803_v5 = vadd.f32 %v1379_v4, %v1800_v2  ;;  %v184_v6 = vpop.f32.mrb[3].mxu0 }
  0xe1   :  { %v1809_v8 = vadd.f32 %v1800_v2, %v184_v6 }
  0xe2   :  { %v309_v11 = vpack.c.bf16 %v1803_v5, %v1812_v9 }
  0xe3   :  { %v308_v10 = vpack.c.bf16 %v1809_v8, %v1806_v7 }
  0xe5   :  { %v1382_v12 = vpop.f32.mrb[4].mxu0  ;;  %1424 = vmatprep.mubr.bf16.mxu1 %v308_v10 }
  0xe6   :  { %v197_v13 = vpop.f32.mrb[5].mxu0  ;;  %1425 = vmatmul.mubr.bf16.vlgmr.msra.gmra.mrb[0].mxu1 %v309_v11  ;;  %v1828_v19 = vadd.f32 %v1382_v12, %v1800_v2 }
  0xe7   :  { %v1383_v14 = vpop.f32.mrb[6].mxu0  ;;  %v1822_v17 = vadd.f32 %v1800_v2, %v197_v13 }
  0xe8   :  { %v1819_v15 = vadd.f32 %v1383_v14, %v1800_v2  ;;  %v200_v16 = vpop.f32.mrb[7].mxu0 }
  0xe9   :  { %v1825_v18 = vadd.f32 %v1800_v2, %v200_v16 }
  0xea   :  { %v311_v21 = vpack.c.bf16 %v1819_v15, %v1828_v19 }
  0xeb   :  { %v310_v20 = vpack.c.bf16 %v1825_v18, %v1822_v17 }
  0xed   :  { %v1386_v22 = vpop.f32.mrb[8].mxu0  ;;  %1428 = vmatprep.mubr.bf16.mxu1 %v310_v20 }
  0xee   :  { %v213_v23 = vpop.f32.mrb[9].mxu0  ;;  %1429 = vmatmul.mubr.bf16.gmra.mrb[4].mxu1 %v311_v21  ;;  %v1844_v29 = vadd.f32 %v1386_v22, %v1800_v2 }
  0xef   :  { %v1387_v24 = vpop.f32.mrb[10].mxu0  ;;  %v1838_v27 = vadd.f32 %v1800_v2, %v213_v23 }
  0xf0   :  { %v1835_v25 = vadd.f32 %v1387_v24, %v1800_v2  ;;  %v216_v26 = vpop.f32.mrb[11].mxu0 }
  0xf1   :  { %v1841_v28 = vadd.f32 %v1800_v2, %v216_v26 }
  0xf2   :  { %v313_v31 = vpack.c.bf16 %v1835_v25, %v1844_v29 }
  0xf3   :  { %v312_v30 = vpack.c.bf16 %v1841_v28, %v1838_v27 }
  0xf5   :  { %v1390_v32 = vpop.f32.mrb[12].mxu0  ;;  %1432 = vmatprep.mubr.bf16.mxu1 %v312_v30 }
  0xf6   :  { %v229_v33 = vpop.f32.mrb[13].mxu0  ;;  %1433 = vmatmul.mubr.bf16.gmra.mrb[8].mxu1 %v313_v31  ;;  %v1860_v39 = vadd.f32 %v1390_v32, %v1800_v2  ;;  %v1585_v31 = vld [vmem:[%s2388_s3 + $0x78] sm:$0xff]   ;;  %v1586_v32 = vld [vmem:[%s2390_s5] sm:$0xff]  }
  0xf7   :  { %v1391_v34 = vpop.f32.mrb[14].mxu0  ;;  %v1854_v37 = vadd.f32 %v1800_v2, %v229_v33  ;;  %1470 = vmatprep.subr.bf16.mxu0 %v1585_v31  ;;  %1552 = vmatprep.subr.bf16.mxu1 %v1586_v32  ;;  %v1945_v33 = vld [vmem:[%s2390_s5 + $0x10] sm:$0xff]  }
  0xf8   :  { %v1851_v35 = vadd.f32 %v1391_v34, %v1800_v2  ;;  %v232_v36 = vpop.f32.mrb[15].mxu0  ;;  %1471 = vmatpush3.bf16.msra.mxu0 %v1585_v31  ;;  %1560 = vmatpush3.bf16.msra.mxu1 %v1586_v32  ;;  %v1952_v34 = vld [vmem:[%s2390_s5 + $0x18] sm:$0xff]  }
  0xf9   :  { %v1857_v38 = vadd.f32 %v1800_v2, %v232_v36  ;;  %1504 = vmatprep.subr.bf16.mxu0 %v1586_v32  ;;  %v1959_v36 = vld [vmem:[%s2390_s5 + $0x20] sm:$0xff]  }
  0xfa   :  { %v315_v41 = vpack.c.bf16 %v1851_v35, %v1860_v39 }
  0xfb   :  { %v314_v40 = vpack.c.bf16 %v1857_v38, %v1854_v37 }
  0xfd   :  { %v1394_v42 = vpop.f32.mrb[16].mxu0  ;;  %1436 = vmatprep.mubr.bf16.mxu1 %v314_v40  ;;  %v1966_v40 = vld [vmem:[%s2390_s5 + $0x28] sm:$0xff]  }
  0xfe   :  { %v245_v43 = vpop.f32.mrb[17].mxu0  ;;  %1437 = vmatmul.mubr.bf16.gmra.mrb[12].mxu1 %v315_v41  ;;  %v1876_v49 = vadd.f32 %v1394_v42, %v1800_v2  ;;  %v1974_v41 = vld [vmem:[%s2391_s4] ss:$0 sm:$0xff] }
  0xff   :  { %v1395_v44 = vpop.f32.mrb[18].mxu0  ;;  %v1870_v47 = vadd.f32 %v1800_v2, %v245_v43 }
 0x100   :  { %v1867_v45 = vadd.f32 %v1395_v44, %v1800_v2  ;;  %v248_v46 = vpop.f32.mrb[19].mxu0 }
 0x101   :  { %v1873_v48 = vadd.f32 %v1800_v2, %v248_v46 }
 0x102   :  { %v317_v51 = vpack.c.bf16 %v1867_v45, %v1876_v49 }
 0x103   :  { %v316_v50 = vpack.c.bf16 %v1873_v48, %v1870_v47 }
 0x105   :  { %v1398_v52 = vpop.f32.mrb[20].mxu0  ;;  %1440 = vmatprep.mubr.bf16.mxu1 %v316_v50 }
 0x106   :  { %v261_v53 = vpop.f32.mrb[21].mxu0  ;;  %1441 = vmatmul.mubr.bf16.gmra.mrb[16].mxu1 %v317_v51  ;;  %v1892_v59 = vadd.f32 %v1398_v52, %v1800_v2 }
 0x107   :  { %v1399_v54 = vpop.f32.mrb[22].mxu0  ;;  %v1886_v57 = vadd.f32 %v1800_v2, %v261_v53 }
 0x108   :  { %v1883_v55 = vadd.f32 %v1399_v54, %v1800_v2  ;;  %v264_v56 = vpop.f32.mrb[23].mxu0 }
 0x109   :  { %v1889_v58 = vadd.f32 %v1800_v2, %v264_v56 }
 0x10a   :  { %v319_v61 = vpack.c.bf16 %v1883_v55, %v1892_v59 }
 0x10b   :  { %v318_v60 = vpack.c.bf16 %v1889_v58, %v1886_v57 }
 0x10d   :  { %v1402_v62 = vpop.f32.mrb[24].mxu0  ;;  %1444 = vmatprep.mubr.bf16.mxu1 %v318_v60 }
 0x10e   :  { %v277_v63 = vpop.f32.mrb[25].mxu0  ;;  %1445 = vmatmul.mubr.bf16.gmra.mrb[20].mxu1 %v319_v61  ;;  %v1908_v10 = vadd.f32 %v1402_v62, %v1800_v2 }
 0x10f   :  { %v1403_v0 = vpop.f32.mrb[26].mxu0  ;;  %v1902_v4 = vadd.f32 %v1800_v2, %v277_v63 }
 0x110   :  { %v1899_v1 = vadd.f32 %v1403_v0, %v1800_v2  ;;  %v280_v3 = vpop.f32.mrb[27].mxu0 }
 0x111   :  { %v1905_v6 = vadd.f32 %v1800_v2, %v280_v3 }
 0x112   :  { %v321_v12 = vpack.c.bf16 %v1899_v1, %v1908_v10 }
 0x113   :  { %v320_v11 = vpack.c.bf16 %v1905_v6, %v1902_v4 }
 0x115   :  { %v1406_v13 = vpop.f32.mrb[28].mxu0  ;;  %1448 = vmatprep.mubr.bf16.mxu1 %v320_v11 }
 0x116   :  { %v293_v14 = vpop.f32.mrb[29].mxu0  ;;  %1449 = vmatmul.mubr.bf16.gmra.mrb[24].mxu1 %v321_v12  ;;  %v1924_v24 = vadd.f32 %v1406_v13, %v1800_v2 }
 0x117   :  { %v1407_v16 = vpop.f32.mrb[30].mxu0  ;;  %v1918_v22 = vadd.f32 %v1800_v2, %v293_v14 }
 0x118   :  { %v1915_v20 = vadd.f32 %v1407_v16, %v1800_v2  ;;  %v296_v21 = vpop.f32.mrb[31].mxu0 }
 0x119   :  { %v1921_v23 = vadd.f32 %v1800_v2, %v296_v21  ;;  %v1939_v2 = vld [vmem:[%s2390_s5 + $0x8] sm:$0xff]  }
 0x11a   :  { %v323_v30 = vpack.c.bf16 %v1915_v20, %v1924_v24  ;;  %1553 = vmatprep.subr.bf16.mxu1 %v1939_v2 }
 0x11b   :  { %v322_v26 = vpack.c.bf16 %v1921_v23, %v1918_v22  ;;  %1561 = vmatpush3.bf16.msra.mxu1 %v1939_v2 }
 0x11c   :  { %1554 = vmatprep.subr.bf16.mxu1 %v1945_v33 }
 0x11d   :  { %1452 = vmatprep.mubr.bf16.mxu1 %v322_v26 }
 0x11e   :  { %1453 = vmatmul.mubr.bf16.gmra.mrb[28].mxu1 %v323_v30 }
 0x11f   :  { %1562 = vmatpush3.bf16.msra.mxu1 %v1945_v33 }
 0x120   :  { %1555 = vmatprep.subr.bf16.mxu1 %v1952_v34 }
 0x123   :  { %1563 = vmatpush3.bf16.msra.mxu1 %v1952_v34 }
 0x124   :  { %1556 = vmatprep.subr.bf16.mxu1 %v1959_v36 }
 0x127   :  { %1564 = vmatpush3.bf16.msra.mxu1 %v1959_v36 }
 0x128   :  { %1557 = vmatprep.subr.bf16.mxu1 %v1966_v40 }
 0x12b   :  { %1565 = vmatpush3.bf16.msra.mxu1 %v1966_v40 }
 0x1b9   :  { %v1426_v42 = vpop.f32.mrb[0].mxu1 }
 0x1ba   :  { %v438_v43 = vadd.f32 %v1426_v42, %v1974_v41  ;;  %v429_v44 = vpop.f32.mrb[1].mxu1 }
 0x1bb   :  { %v430_v46 = vadd.f32 %v1974_v41, %v429_v44  ;;  %v1427_v50 = vpop.f32.mrb[2].mxu1 }
 0x1bc   :  { %v441_v51 = vadd.f32 %v1427_v50, %v1974_v41  ;;  %v432_v52 = vpop.f32.mrb[3].mxu1  ;;  %v558_v56 = vmax.f32 %v438_v43, 0.0 }
 0x1bd   :  { %v556_v53 = vmax.f32 %v430_v46, 0.0  ;;  %v433_v54 = vadd.f32 %v1974_v41, %v432_v52 }
 0x1be   :  { %v559_v60 = vmax.f32 %v441_v51, 0.0  ;;  %v1990_v11 = vadd.f32 %v558_v56, %v1812_v9 }
 0x1bf   :  { %v557_v61 = vmax.f32 %v433_v54, 0.0  ;;  %v1984_v63 = vadd.f32 %v556_v53, %v1806_v7 }
 0x1c0   :  { %v1981_v62 = vadd.f32 %v559_v60, %v1803_v5 }
 0x1c1   :  { %v1987_v0 = vadd.f32 %v557_v61, %v1809_v8  ;;  %v1430_v3 = vpop.f32.mrb[4].mxu1 }
 0x1c2   :  { %v454_v12 = vadd.f32 %v1430_v3, %v1974_v41  ;;  %v445_v13 = vpop.f32.mrb[5].mxu1  ;;  %v621_v7 = vpack.c.bf16 %v1981_v62, %v1990_v11 }
 0x1c3   :  { %v446_v14 = vadd.f32 %v1974_v41, %v445_v13  ;;  %v1431_v16 = vpop.f32.mrb[6].mxu1  ;;  %v620_v5 = vpack.c.bf16 %v1987_v0, %v1984_v63 }
 0x1c4   :  { %v457_v21 = vadd.f32 %v1431_v16, %v1974_v41  ;;  %v448_v8 = vpop.f32.mrb[7].mxu1  ;;  %v562_v9 = vmax.f32 %v454_v12, 0.0 }
 0x1c5   :  { %v560_v26 = vmax.f32 %v446_v14, 0.0  ;;  %v449_v30 = vadd.f32 %v1974_v41, %v448_v8  ;;  %1472 = vmatprep.mubr.bf16.mxu0 %v620_v5 }
 0x1c6   :  { %v563_v31 = vmax.f32 %v457_v21, 0.0  ;;  %1473 = vmatmul.mubr.bf16.vlgmr.msra.gmra.mrb[32].mxu0 %v621_v7  ;;  %v2011_v51 = vadd.f32 %v562_v9, %v1828_v19 }
 0x1c7   :  { %v561_v42 = vmax.f32 %v449_v30, 0.0  ;;  %1505 = vmatpush3.bf16.msra.mxu0 %v1586_v32  ;;  %v2005_v44 = vadd.f32 %v560_v26, %v1822_v17 }
 0x1c8   :  { %v2001_v43 = vadd.f32 %v563_v31, %v1819_v15  ;;  %1506 = vmatprep.subr.bf16.mxu0 %v1939_v2 }
 0x1c9   :  { %v2008_v46 = vadd.f32 %v561_v42, %v1825_v18  ;;  %v1434_v50 = vpop.f32.mrb[8].mxu1 }
 0x1ca   :  { %v470_v52 = vadd.f32 %v1434_v50, %v1974_v41  ;;  %v461_v53 = vpop.f32.mrb[9].mxu1  ;;  %v623_v18 = vpack.c.bf16 %v2001_v43, %v2011_v51 }
 0x1cb   :  { %v462_v32 = vadd.f32 %v1974_v41, %v461_v53  ;;  %v1435_v54 = vpop.f32.mrb[10].mxu1  ;;  %v622_v15 = vpack.c.bf16 %v2008_v46, %v2005_v44  ;;  %1507 = vmatpush3.bf16.msra.mxu0 %v1939_v2 }
 0x1cc   :  { %v473_v17 = vadd.f32 %v1435_v54, %v1974_v41  ;;  %v464_v56 = vpop.f32.mrb[11].mxu1  ;;  %1508 = vmatprep.subr.bf16.mxu0 %v1945_v33  ;;  %v566_v61 = vmax.f32 %v470_v52, 0.0 }
 0x1cd   :  { %v564_v19 = vmax.f32 %v462_v32, 0.0  ;;  %v465_v60 = vadd.f32 %v1974_v41, %v464_v56  ;;  %1476 = vmatprep.mubr.bf16.mxu0 %v622_v15 }
 0x1ce   :  { %v567_v3 = vmax.f32 %v473_v17, 0.0  ;;  %1477 = vmatmul.mubr.bf16.gmra.mrb[36].mxu0 %v623_v18  ;;  %v2035_v5 = vadd.f32 %v566_v61, %v1844_v29 }
 0x1cf   :  { %v565_v12 = vmax.f32 %v465_v60, 0.0  ;;  %1509 = vmatpush3.bf16.msra.mxu0 %v1945_v33  ;;  %v2029_v13 = vadd.f32 %v564_v19, %v1838_v27 }
 0x1d0   :  { %v2025_v2 = vadd.f32 %v567_v3, %v1835_v25  ;;  %1510 = vmatprep.subr.bf16.mxu0 %v1952_v34 }
 0x1d1   :  { %v2032_v14 = vadd.f32 %v565_v12, %v1841_v28  ;;  %v1438_v16 = vpop.f32.mrb[12].mxu1 }
 0x1d2   :  { %v486_v7 = vadd.f32 %v1438_v16, %v1974_v41  ;;  %v477_v21 = vpop.f32.mrb[13].mxu1  ;;  %v625_v28 = vpack.c.bf16 %v2025_v2, %v2035_v5 }
 0x1d3   :  { %v478_v33 = vadd.f32 %v1974_v41, %v477_v21  ;;  %v1439_v8 = vpop.f32.mrb[14].mxu1  ;;  %v624_v25 = vpack.c.bf16 %v2032_v14, %v2029_v13  ;;  %1511 = vmatpush3.bf16.msra.mxu0 %v1952_v34 }
 0x1d4   :  { %v489_v27 = vadd.f32 %v1439_v8, %v1974_v41  ;;  %v480_v26 = vpop.f32.mrb[15].mxu1  ;;  %1512 = vmatprep.subr.bf16.mxu0 %v1959_v36  ;;  %v570_v9 = vmax.f32 %v486_v7, 0.0 }
 0x1d5   :  { %v568_v29 = vmax.f32 %v478_v33, 0.0  ;;  %v481_v30 = vadd.f32 %v1974_v41, %v480_v26  ;;  %1480 = vmatprep.mubr.bf16.mxu0 %v624_v25 }
 0x1d6   :  { %v571_v31 = vmax.f32 %v489_v27, 0.0  ;;  %1481 = vmatmul.mubr.bf16.gmra.mrb[40].mxu0 %v625_v28  ;;  %v2059_v32 = vadd.f32 %v570_v9, %v1860_v39 }
 0x1d7   :  { %v569_v42 = vmax.f32 %v481_v30, 0.0  ;;  %1513 = vmatpush3.bf16.msra.mxu0 %v1959_v36  ;;  %v2053_v50 = vadd.f32 %v568_v29, %v1854_v37 }
 0x1d8   :  { %v2049_v34 = vadd.f32 %v571_v31, %v1851_v35  ;;  %1514 = vmatprep.subr.bf16.mxu0 %v1966_v40 }
 0x1d9   :  { %v2056_v52 = vadd.f32 %v569_v42, %v1857_v38  ;;  %v1442_v53 = vpop.f32.mrb[16].mxu1 }
 0x1da   :  { %v502_v54 = vadd.f32 %v1442_v53, %v1974_v41  ;;  %v493_v15 = vpop.f32.mrb[17].mxu1  ;;  %v627_v38 = vpack.c.bf16 %v2049_v34, %v2059_v32 }
 0x1db   :  { %v494_v36 = vadd.f32 %v1974_v41, %v493_v15  ;;  %v1443_v17 = vpop.f32.mrb[18].mxu1  ;;  %v626_v35 = vpack.c.bf16 %v2056_v52, %v2053_v50  ;;  %1515 = vmatpush3.bf16.msra.mxu0 %v1966_v40 }
 0x1dc   :  { %v505_v37 = vadd.f32 %v1443_v17, %v1974_v41  ;;  %v496_v56 = vpop.f32.mrb[19].mxu1  ;;  %v574_v19 = vmax.f32 %v502_v54, 0.0 }
 0x1dd   :  { %v572_v18 = vmax.f32 %v494_v36, 0.0  ;;  %v497_v39 = vadd.f32 %v1974_v41, %v496_v56  ;;  %1484 = vmatprep.mubr.bf16.mxu0 %v626_v35 }
 0x1de   :  { %v575_v60 = vmax.f32 %v505_v37, 0.0  ;;  %1485 = vmatmul.mubr.bf16.gmra.mrb[44].mxu0 %v627_v38  ;;  %v2080_v7 = vadd.f32 %v574_v19, %v1876_v49 }
 0x1df   :  { %v573_v61 = vmax.f32 %v497_v39, 0.0  ;;  %v2074_v12 = vadd.f32 %v572_v18, %v1870_v47 }
 0x1e0   :  { %v2071_v3 = vadd.f32 %v575_v60, %v1867_v45 }
 0x1e1   :  { %v2077_v40 = vadd.f32 %v573_v61, %v1873_v48  ;;  %v1446_v16 = vpop.f32.mrb[20].mxu1 }
 0x1e2   :  { %v518_v21 = vadd.f32 %v1446_v16, %v1974_v41  ;;  %v509_v33 = vpop.f32.mrb[21].mxu1  ;;  %v629_v48 = vpack.c.bf16 %v2071_v3, %v2080_v7 }
 0x1e3   :  { %v510_v8 = vadd.f32 %v1974_v41, %v509_v33  ;;  %v1447_v25 = vpop.f32.mrb[22].mxu1  ;;  %v628_v45 = vpack.c.bf16 %v2077_v40, %v2074_v12 }
 0x1e4   :  { %v521_v27 = vadd.f32 %v1447_v25, %v1974_v41  ;;  %v512_v47 = vpop.f32.mrb[23].mxu1  ;;  %v578_v49 = vmax.f32 %v518_v21, 0.0 }
 0x1e5   :  { %v576_v26 = vmax.f32 %v510_v8, 0.0  ;;  %v513_v28 = vadd.f32 %v1974_v41, %v512_v47  ;;  %1488 = vmatprep.mubr.bf16.mxu0 %v628_v45 }
 0x1e6   :  { %v579_v29 = vmax.f32 %v521_v27, 0.0  ;;  %1489 = vmatmul.mubr.bf16.gmra.mrb[48].mxu0 %v629_v48  ;;  %v2100_v54 = vadd.f32 %v578_v49, %v1892_v59 }
 0x1e7   :  { %v577_v30 = vmax.f32 %v513_v28, 0.0  ;;  %v2094_v31 = vadd.f32 %v576_v26, %v1886_v57 }
 0x1e8   :  { %v2091_v9 = vadd.f32 %v579_v29, %v1883_v55 }
 0x1e9   :  { %v2097_v42 = vadd.f32 %v577_v30, %v1889_v58  ;;  %v1450_v53 = vpop.f32.mrb[24].mxu1 }
 0x1ea   :  { %v534_v15 = vadd.f32 %v1450_v53, %v1974_v41  ;;  %v525_v36 = vpop.f32.mrb[25].mxu1  ;;  %v631_v58 = vpack.c.bf16 %v2091_v9, %v2100_v54 }
 0x1eb   :  { %v526_v17 = vadd.f32 %v1974_v41, %v525_v36  ;;  %v1451_v35 = vpop.f32.mrb[26].mxu1  ;;  %v630_v55 = vpack.c.bf16 %v2097_v42, %v2094_v31 }
 0x1ec   :  { %v537_v37 = vadd.f32 %v1451_v35, %v1974_v41  ;;  %v528_v57 = vpop.f32.mrb[27].mxu1  ;;  %v582_v59 = vmax.f32 %v534_v15, 0.0 }
 0x1ed   :  { %v580_v56 = vmax.f32 %v526_v17, 0.0  ;;  %v529_v38 = vadd.f32 %v1974_v41, %v528_v57  ;;  %1492 = vmatprep.mubr.bf16.mxu0 %v630_v55 }
 0x1ee   :  { %v583_v18 = vmax.f32 %v537_v37, 0.0  ;;  %1493 = vmatmul.mubr.bf16.gmra.mrb[52].mxu0 %v631_v58  ;;  %v2120_v21 = vadd.f32 %v582_v59, %v1908_v10 }
 0x1ef   :  { %v581_v39 = vmax.f32 %v529_v38, 0.0  ;;  %v2114_v60 = vadd.f32 %v580_v56, %v1902_v4 }
 0x1f0   :  { %v2111_v19 = vadd.f32 %v583_v18, %v1899_v1 }
 0x1f1   :  { %v2117_v61 = vadd.f32 %v581_v39, %v1905_v6  ;;  %v1454_v16 = vpop.f32.mrb[28].mxu1 }
 0x1f2   :  { %v550_v33 = vadd.f32 %v1454_v16, %v1974_v41  ;;  %v541_v8 = vpop.f32.mrb[29].mxu1  ;;  %v633_v6 = vpack.c.bf16 %v2111_v19, %v2120_v21 }
 0x1f3   :  { %v542_v25 = vadd.f32 %v1974_v41, %v541_v8  ;;  %v1455_v45 = vpop.f32.mrb[30].mxu1  ;;  %v632_v1 = vpack.c.bf16 %v2117_v61, %v2114_v60 }
 0x1f4   :  { %v553_v27 = vadd.f32 %v1455_v45, %v1974_v41  ;;  %v544_v4 = vpop.f32.mrb[31].mxu1  ;;  %v586_v10 = vmax.f32 %v550_v33, 0.0 }
 0x1f5   :  { %v584_v47 = vmax.f32 %v542_v25, 0.0  ;;  %v545_v48 = vadd.f32 %v1974_v41, %v544_v4  ;;  %1496 = vmatprep.mubr.bf16.mxu0 %v632_v1 }
 0x1f6   :  { %v587_v26 = vmax.f32 %v553_v27, 0.0  ;;  %1497 = vmatmul.mubr.bf16.gmra.mrb[56].mxu0 %v633_v6  ;;  %v2140_v53 = vadd.f32 %v586_v10, %v1924_v24 }
 0x1f7   :  { %v585_v28 = vmax.f32 %v545_v48, 0.0  ;;  %v2134_v29 = vadd.f32 %v584_v47, %v1918_v22  ;;  %v1593_v22 = vld [vmem:[%s2390_s5 + $0x38] sm:$0xff]  }
 0x1f8   :  { %v2131_v49 = vadd.f32 %v587_v26, %v1915_v20  ;;  %v1592_v20 = vld [vmem:[%s2390_s5 + $0x30] sm:$0xff]  }
 0x1f9   :  { %v2137_v30 = vadd.f32 %v585_v28, %v1921_v23  ;;  %1558 = vmatprep.subr.bf16.mxu1 %v1592_v20  ;;  %1516 = vmatprep.subr.bf16.mxu0 %v1592_v20  ;;  %v2155_v23 = vld [vmem:[%s2391_s4 + $0x1] ss:$0 sm:$0xff] }
 0x1fa   :  { %v635_v15 = vpack.c.bf16 %v2131_v49, %v2140_v53  ;;  %1566 = vmatpush3.bf16.msra.mxu1 %v1592_v20  ;;  %1517 = vmatpush3.bf16.msra.mxu0 %v1592_v20 }
 0x1fb   :  { %v634_v41 = vpack.c.bf16 %v2137_v30, %v2134_v29  ;;  %1518 = vmatprep.subr.bf16.mxu0 %v1593_v22  ;;  %1559 = vmatprep.subr.bf16.mxu1 %v1593_v22 }
 0x1fd   :  { %1500 = vmatprep.mubr.bf16.mxu0 %v634_v41 }
 0x1fe   :  { %1501 = vmatmul.mubr.bf16.gmra.mrb[60].mxu0 %v635_v15  ;;  %1567 = vmatpush3.bf16.msra.mxu1 %v1593_v22 }
 0x1ff   :  { %1519 = vmatpush3.bf16.msra.mxu0 %v1593_v22 }
 0x299   :  { %v1474_v24 = vpop.f32.mrb[32].mxu0 }
 0x29a   :  { %v752_v36 = vadd.f32 %v1474_v24, %v2155_v23  ;;  %v743_v17 = vpop.f32.mrb[33].mxu0 }
 0x29b   :  { %v744_v35 = vadd.f32 %v2155_v23, %v743_v17  ;;  %v1475_v55 = vpop.f32.mrb[34].mxu0 }
 0x29c   :  { %v872_v37 = vmax.f32 %v752_v36, 0.0  ;;  %v755_v57 = vadd.f32 %v1475_v55, %v2155_v23  ;;  %v746_v58 = vpop.f32.mrb[35].mxu0 }
 0x29d   :  { %v870_v56 = vmax.f32 %v744_v35, 0.0  ;;  %v747_v38 = vadd.f32 %v2155_v23, %v746_v58 }
 0x29e   :  { %v873_v59 = vmax.f32 %v755_v57, 0.0  ;;  %v904_v39 = vadd.f32 %v872_v37, %v1990_v11 }
 0x29f   :  { %v871_v18 = vmax.f32 %v747_v38, 0.0  ;;  %v902_v33 = vadd.f32 %v870_v56, %v1984_v63 }
 0x2a0   :  { %v905_v16 = vadd.f32 %v873_v59, %v1981_v62 }
 0x2a1   :  { %v903_v8 = vadd.f32 %v871_v18, %v1987_v0  ;;  %v1478_v25 = vpop.f32.mrb[36].mxu0 }
 0x2a2   :  { %v935_v45 = vpack.c.bf16 %v905_v16, %v904_v39  ;;  %v768_v1 = vadd.f32 %v1478_v25, %v2155_v23  ;;  %v759_v27 = vpop.f32.mrb[37].mxu0 }
 0x2a3   :  { %v760_v4 = vadd.f32 %v2155_v23, %v759_v27  ;;  %v1479_v6 = vpop.f32.mrb[38].mxu0  ;;  %v934_v47 = vpack.c.bf16 %v903_v8, %v902_v33 }
 0x2a4   :  { %v876_v48 = vmax.f32 %v768_v1, 0.0  ;;  %v771_v10 = vadd.f32 %v1479_v6, %v2155_v23  ;;  %v762_v26 = vpop.f32.mrb[39].mxu0 }
 0x2a5   :  { %v874_v11 = vmax.f32 %v760_v4, 0.0  ;;  %v763_v62 = vadd.f32 %v2155_v23, %v762_v26  ;;  %1520 = vmatprep.mubr.bf16.mxu0 %v934_v47 }
 0x2a6   :  { %v877_v63 = vmax.f32 %v771_v10, 0.0  ;;  %1521 = vmatmul.mubr.bf16.vlgmr.msra.gmra.mrb[64].mxu0 %v935_v45  ;;  %v908_v28 = vadd.f32 %v876_v48, %v2011_v51 }
 0x2a7   :  { %v875_v0 = vmax.f32 %v763_v62, 0.0  ;;  %v906_v15 = vadd.f32 %v874_v11, %v2005_v44 }
 0x2a8   :  { %v909_v41 = vadd.f32 %v877_v63, %v2001_v43 }
 0x2a9   :  { %v907_v20 = vadd.f32 %v875_v0, %v2008_v46  ;;  %v1482_v22 = vpop.f32.mrb[40].mxu0 }
 0x2aa   :  { %v937_v24 = vpack.c.bf16 %v909_v41, %v908_v28  ;;  %v784_v36 = vadd.f32 %v1482_v22, %v2155_v23  ;;  %v775_v17 = vpop.f32.mrb[41].mxu0 }
 0x2ab   :  { %v776_v35 = vadd.f32 %v2155_v23, %v775_v17  ;;  %v1483_v55 = vpop.f32.mrb[42].mxu0  ;;  %v936_v37 = vpack.c.bf16 %v907_v20, %v906_v15 }
 0x2ac   :  { %v880_v57 = vmax.f32 %v784_v36, 0.0  ;;  %v787_v58 = vadd.f32 %v1483_v55, %v2155_v23  ;;  %v778_v56 = vpop.f32.mrb[43].mxu0 }
 0x2ad   :  { %v878_v51 = vmax.f32 %v776_v35, 0.0  ;;  %v779_v43 = vadd.f32 %v2155_v23, %v778_v56  ;;  %1524 = vmatprep.mubr.bf16.mxu1 %v936_v37 }
 0x2ae   :  { %v881_v44 = vmax.f32 %v787_v58, 0.0  ;;  %1525 = vmatmul.mubr.bf16.vlgmr.msra.gmra.mrb[32].mxu1 %v937_v24  ;;  %v912_v38 = vadd.f32 %v880_v57, %v2035_v5 }
 0x2af   :  { %v879_v46 = vmax.f32 %v779_v43, 0.0  ;;  %v910_v18 = vadd.f32 %v878_v51, %v2029_v13 }
 0x2b0   :  { %v913_v59 = vadd.f32 %v881_v44, %v2025_v2 }
 0x2b1   :  { %v911_v39 = vadd.f32 %v879_v46, %v2032_v14  ;;  %v1486_v16 = vpop.f32.mrb[44].mxu0 }
 0x2b2   :  { %v800_v33 = vadd.f32 %v1486_v16, %v2155_v23  ;;  %v791_v8 = vpop.f32.mrb[45].mxu0  ;;  %v939_v25 = vpack.c.bf16 %v913_v59, %v912_v38 }
 0x2b3   :  { %v792_v45 = vadd.f32 %v2155_v23, %v791_v8  ;;  %v1487_v1 = vpop.f32.mrb[46].mxu0  ;;  %v938_v27 = vpack.c.bf16 %v911_v39, %v910_v18 }
 0x2b4   :  { %v884_v4 = vmax.f32 %v800_v33, 0.0  ;;  %v803_v6 = vadd.f32 %v1487_v1, %v2155_v23  ;;  %v794_v47 = vpop.f32.mrb[47].mxu0 }
 0x2b5   :  { %v882_v5 = vmax.f32 %v792_v45, 0.0  ;;  %v795_v2 = vadd.f32 %v2155_v23, %v794_v47  ;;  %1528 = vmatprep.mubr.bf16.mxu1 %v938_v27 }
 0x2b6   :  { %v885_v13 = vmax.f32 %v803_v6, 0.0  ;;  %1529 = vmatmul.mubr.bf16.gmra.mrb[36].mxu1 %v939_v25  ;;  %v916_v48 = vadd.f32 %v884_v4, %v2059_v32 }
 0x2b7   :  { %v883_v14 = vmax.f32 %v795_v2, 0.0  ;;  %v914_v26 = vadd.f32 %v882_v5, %v2053_v50 }
 0x2b8   :  { %v917_v10 = vadd.f32 %v885_v13, %v2049_v34 }
 0x2b9   :  { %v915_v11 = vadd.f32 %v883_v14, %v2056_v52  ;;  %v1490_v62 = vpop.f32.mrb[48].mxu0 }
 0x2ba   :  { %v816_v63 = vadd.f32 %v1490_v62, %v2155_v23  ;;  %v807_v0 = vpop.f32.mrb[49].mxu0  ;;  %v941_v28 = vpack.c.bf16 %v917_v10, %v916_v48 }
 0x2bb   :  { %v808_v41 = vadd.f32 %v2155_v23, %v807_v0  ;;  %v1491_v15 = vpop.f32.mrb[50].mxu0  ;;  %v940_v20 = vpack.c.bf16 %v915_v11, %v914_v26 }
 0x2bc   :  { %v888_v22 = vmax.f32 %v816_v63, 0.0  ;;  %v819_v24 = vadd.f32 %v1491_v15, %v2155_v23  ;;  %v810_v36 = vpop.f32.mrb[51].mxu0 }
 0x2bd   :  { %v886_v32 = vmax.f32 %v808_v41, 0.0  ;;  %v811_v34 = vadd.f32 %v2155_v23, %v810_v36  ;;  %1532 = vmatprep.mubr.bf16.mxu1 %v940_v20 }
 0x2be   :  { %v889_v50 = vmax.f32 %v819_v24, 0.0  ;;  %1533 = vmatmul.mubr.bf16.gmra.mrb[40].mxu1 %v941_v28  ;;  %v920_v17 = vadd.f32 %v888_v22, %v2080_v7 }
 0x2bf   :  { %v887_v52 = vmax.f32 %v811_v34, 0.0  ;;  %v918_v55 = vadd.f32 %v886_v32, %v2074_v12 }
 0x2c0   :  { %v921_v35 = vadd.f32 %v889_v50, %v2071_v3 }
 0x2c1   :  { %v919_v37 = vadd.f32 %v887_v52, %v2077_v40  ;;  %v1494_v57 = vpop.f32.mrb[52].mxu0 }
 0x2c2   :  { %v832_v58 = vadd.f32 %v1494_v57, %v2155_v23  ;;  %v823_v56 = vpop.f32.mrb[53].mxu0  ;;  %v943_v51 = vpack.c.bf16 %v921_v35, %v920_v17 }
 0x2c3   :  { %v824_v43 = vadd.f32 %v2155_v23, %v823_v56  ;;  %v1495_v44 = vpop.f32.mrb[54].mxu0  ;;  %v942_v46 = vpack.c.bf16 %v919_v37, %v918_v55 }
 0x2c4   :  { %v892_v38 = vmax.f32 %v832_v58, 0.0  ;;  %v835_v59 = vadd.f32 %v1495_v44, %v2155_v23  ;;  %v826_v18 = vpop.f32.mrb[55].mxu0 }
 0x2c5   :  { %v890_v7 = vmax.f32 %v824_v43, 0.0  ;;  %v827_v3 = vadd.f32 %v2155_v23, %v826_v18  ;;  %1536 = vmatprep.mubr.bf16.mxu1 %v942_v46 }
 0x2c6   :  { %v893_v12 = vmax.f32 %v835_v59, 0.0  ;;  %1537 = vmatmul.mubr.bf16.gmra.mrb[44].mxu1 %v943_v51  ;;  %v924_v39 = vadd.f32 %v892_v38, %v2100_v54 }
 0x2c7   :  { %v891_v40 = vmax.f32 %v827_v3, 0.0  ;;  %v922_v33 = vadd.f32 %v890_v7, %v2094_v31 }
 0x2c8   :  { %v925_v16 = vadd.f32 %v893_v12, %v2091_v9 }
 0x2c9   :  { %v923_v8 = vadd.f32 %v891_v40, %v2097_v42  ;;  %v1498_v25 = vpop.f32.mrb[56].mxu0 }
 0x2ca   :  { %v848_v45 = vadd.f32 %v1498_v25, %v2155_v23  ;;  %v839_v1 = vpop.f32.mrb[57].mxu0  ;;  %v945_v27 = vpack.c.bf16 %v925_v16, %v924_v39 }
 0x2cb   :  { %v840_v4 = vadd.f32 %v2155_v23, %v839_v1  ;;  %v1499_v6 = vpop.f32.mrb[58].mxu0  ;;  %v944_v47 = vpack.c.bf16 %v923_v8, %v922_v33 }
 0x2cc   :  { %v896_v5 = vmax.f32 %v848_v45, 0.0  ;;  %v851_v2 = vadd.f32 %v1499_v6, %v2155_v23  ;;  %v842_v13 = vpop.f32.mrb[59].mxu0 }
 0x2cd   :  { %v894_v54 = vmax.f32 %v840_v4, 0.0  ;;  %v843_v9 = vadd.f32 %v2155_v23, %v842_v13  ;;  %1540 = vmatprep.mubr.bf16.mxu1 %v944_v47 }
 0x2ce   :  { %v897_v31 = vmax.f32 %v851_v2, 0.0  ;;  %1541 = vmatmul.mubr.bf16.gmra.mrb[48].mxu1 %v945_v27  ;;  %v928_v14 = vadd.f32 %v896_v5, %v2120_v21 }
 0x2cf   :  { %v895_v42 = vmax.f32 %v843_v9, 0.0  ;;  %v926_v10 = vadd.f32 %v894_v54, %v2114_v60 }
 0x2d0   :  { %v929_v48 = vadd.f32 %v897_v31, %v2111_v19 }
 0x2d1   :  { %v927_v26 = vadd.f32 %v895_v42, %v2117_v61  ;;  %v1502_v11 = vpop.f32.mrb[60].mxu0 }
 0x2d2   :  { %v864_v62 = vadd.f32 %v1502_v11, %v2155_v23  ;;  %v855_v63 = vpop.f32.mrb[61].mxu0  ;;  %v947_v0 = vpack.c.bf16 %v929_v48, %v928_v14 }
 0x2d3   :  { %v856_v28 = vadd.f32 %v2155_v23, %v855_v63  ;;  %v1503_v41 = vpop.f32.mrb[62].mxu0  ;;  %v946_v15 = vpack.c.bf16 %v927_v26, %v926_v10 }
 0x2d4   :  { %v900_v20 = vmax.f32 %v864_v62, 0.0  ;;  %v867_v22 = vadd.f32 %v1503_v41, %v2155_v23  ;;  %v858_v24 = vpop.f32.mrb[63].mxu0 }
 0x2d5   :  { %v898_v21 = vmax.f32 %v856_v28, 0.0  ;;  %v859_v19 = vadd.f32 %v2155_v23, %v858_v24  ;;  %1544 = vmatprep.mubr.bf16.mxu1 %v946_v15  ;;  %v2224_v23 = vld [vmem:[%s2392_s6] ss:$0 sm:$0xff] }
 0x2d6   :  { %v901_v60 = vmax.f32 %v867_v22, 0.0  ;;  %1545 = vmatmul.mubr.bf16.gmra.mrb[52].mxu1 %v947_v0  ;;  %v932_v36 = vadd.f32 %v900_v20, %v2140_v53 }
 0x2d7   :  { %v899_v61 = vmax.f32 %v859_v19, 0.0  ;;  %v930_v34 = vadd.f32 %v898_v21, %v2134_v29 }
 0x2d8   :  { %v933_v32 = vadd.f32 %v901_v60, %v2131_v49 }
 0x2d9   :  { %v931_v50 = vadd.f32 %v899_v61, %v2137_v30 }
 0x2da   :  { %v949_v52 = vpack.c.bf16 %v933_v32, %v932_v36 }
 0x2db   :  { %v948_v17 = vpack.c.bf16 %v931_v50, %v930_v34 }
 0x2dd   :  { %1548 = vmatprep.mubr.bf16.mxu1 %v948_v17 }
 0x2de   :  { %1549 = vmatmul.mubr.bf16.gmra.mrb[56].mxu1 %v949_v52 }
 0x379   :  { %v1522_v35 = vpop.f32.mrb[64].mxu0 }
 0x37a   :  { %v1064_v55 = vadd.f32 %v1522_v35, %v2224_v23  ;;  %v1055_v53 = vpop.f32.mrb[65].mxu0 }
 0x37b   :  { %v1056_v49 = vadd.f32 %v2224_v23, %v1055_v53  ;;  %v1523_v37 = vpop.f32.mrb[66].mxu0 }
 0x37c   :  { %1185 = vst.msk [vmem:[%s2393_s7 + $0x10] sm:$0xff] %vm1182_vm1, %v1064_v55  ;;  %v1067_v29 = vadd.f32 %v1523_v37, %v2224_v23  ;;  %v1058_v30 = vpop.f32.mrb[67].mxu0 }
 0x37d   :  { %1183 = vst.msk [vmem:[%s2393_s7] sm:$0xff] %vm1182_vm1, %v1056_v49  ;;  %v1059_v57 = vadd.f32 %v2224_v23, %v1058_v30 }
 0x37e   :  { %1186 = vst.msk [vmem:[%s2393_s7 + $0x18] sm:$0xff] %vm1182_vm1, %v1067_v29 }
 0x37f   :  { %1184 = vst.msk [vmem:[%s2393_s7 + $0x8] sm:$0xff] %vm1182_vm1, %v1059_v57 }
 0x381   :  { %v1526_v58 = vpop.f32.mrb[32].mxu1 }
 0x382   :  { %v1080_v56 = vadd.f32 %v1526_v58, %v2224_v23  ;;  %v1071_v51 = vpop.f32.mrb[33].mxu1 }
 0x383   :  { %v1072_v43 = vadd.f32 %v2224_v23, %v1071_v51  ;;  %v1527_v44 = vpop.f32.mrb[34].mxu1 }
 0x384   :  { %1189 = vst.msk [vmem:[%s2393_s7 + $0x30] sm:$0xff] %vm1182_vm1, %v1080_v56  ;;  %v1083_v46 = vadd.f32 %v1527_v44, %v2224_v23  ;;  %v1074_v38 = vpop.f32.mrb[35].mxu1 }
 0x385   :  { %1187 = vst.msk [vmem:[%s2393_s7 + $0x20] sm:$0xff] %vm1182_vm1, %v1072_v43  ;;  %v1075_v59 = vadd.f32 %v2224_v23, %v1074_v38 }
 0x386   :  { %1190 = vst.msk [vmem:[%s2393_s7 + $0x38] sm:$0xff] %vm1182_vm1, %v1083_v46 }
 0x387   :  { %1188 = vst.msk [vmem:[%s2393_s7 + $0x28] sm:$0xff] %vm1182_vm1, %v1075_v59 }
 0x389   :  { %v1530_v18 = vpop.f32.mrb[36].mxu1 }
 0x38a   :  { %v1096_v7 = vadd.f32 %v1530_v18, %v2224_v23  ;;  %v1087_v3 = vpop.f32.mrb[37].mxu1 }
 0x38b   :  { %v1088_v12 = vadd.f32 %v2224_v23, %v1087_v3  ;;  %v1531_v40 = vpop.f32.mrb[38].mxu1 }
 0x38c   :  { %1193 = vst.msk [vmem:[%s2393_s7 + $0x50] sm:$0xff] %vm1182_vm1, %v1096_v7  ;;  %v1099_v39 = vadd.f32 %v1531_v40, %v2224_v23  ;;  %v1090_v16 = vpop.f32.mrb[39].mxu1 }
 0x38d   :  { %1191 = vst.msk [vmem:[%s2393_s7 + $0x40] sm:$0xff] %vm1182_vm1, %v1088_v12  ;;  %v1091_v33 = vadd.f32 %v2224_v23, %v1090_v16 }
 0x38e   :  { %1194 = vst.msk [vmem:[%s2393_s7 + $0x58] sm:$0xff] %vm1182_vm1, %v1099_v39 }
 0x38f   :  { %1192 = vst.msk [vmem:[%s2393_s7 + $0x48] sm:$0xff] %vm1182_vm1, %v1091_v33 }
 0x391   :  { %v1534_v8 = vpop.f32.mrb[40].mxu1 }
 0x392   :  { %v1112_v25 = vadd.f32 %v1534_v8, %v2224_v23  ;;  %v1103_v45 = vpop.f32.mrb[41].mxu1 }
 0x393   :  { %v1104_v1 = vadd.f32 %v2224_v23, %v1103_v45  ;;  %v1535_v27 = vpop.f32.mrb[42].mxu1 }
 0x394   :  { %1197 = vst.msk [vmem:[%s2393_s7 + $0x70] sm:$0xff] %vm1182_vm1, %v1112_v25  ;;  %v1115_v4 = vadd.f32 %v1535_v27, %v2224_v23  ;;  %v1106_v6 = vpop.f32.mrb[43].mxu1 }
 0x395   :  { %1195 = vst.msk [vmem:[%s2393_s7 + $0x60] sm:$0xff] %vm1182_vm1, %v1104_v1  ;;  %v1107_v47 = vadd.f32 %v2224_v23, %v1106_v6 }
 0x396   :  { %1198 = vst.msk [vmem:[%s2393_s7 + $0x78] sm:$0xff] %vm1182_vm1, %v1115_v4 }
 0x397   :  { %1196 = vst.msk [vmem:[%s2393_s7 + $0x68] sm:$0xff] %vm1182_vm1, %v1107_v47 }
 0x399   :  { %v1538_v5 = vpop.f32.mrb[44].mxu1 }
 0x39a   :  { %v1128_v2 = vadd.f32 %v1538_v5, %v2224_v23  ;;  %v1119_v13 = vpop.f32.mrb[45].mxu1 }
 0x39b   :  { %v1120_v54 = vadd.f32 %v2224_v23, %v1119_v13  ;;  %v1539_v9 = vpop.f32.mrb[46].mxu1 }
 0x39c   :  { %1201 = vst.msk [vmem:[%s2393_s7 + $0x90] sm:$0xff] %vm1182_vm1, %v1128_v2  ;;  %v1131_v31 = vadd.f32 %v1539_v9, %v2224_v23  ;;  %v1122_v42 = vpop.f32.mrb[47].mxu1 }
 0x39d   :  { %1199 = vst.msk [vmem:[%s2393_s7 + $0x80] sm:$0xff] %vm1182_vm1, %v1120_v54  ;;  %v1123_v14 = vadd.f32 %v2224_v23, %v1122_v42 }
 0x39e   :  { %1202 = vst.msk [vmem:[%s2393_s7 + $0x98] sm:$0xff] %vm1182_vm1, %v1131_v31 }
 0x39f   :  { %1200 = vst.msk [vmem:[%s2393_s7 + $0x88] sm:$0xff] %vm1182_vm1, %v1123_v14 }
 0x3a1   :  { %v1542_v48 = vpop.f32.mrb[48].mxu1 }
 0x3a2   :  { %v1144_v10 = vadd.f32 %v1542_v48, %v2224_v23  ;;  %v1135_v26 = vpop.f32.mrb[49].mxu1 }
 0x3a3   :  { %v1136_v11 = vadd.f32 %v2224_v23, %v1135_v26  ;;  %v1543_v62 = vpop.f32.mrb[50].mxu1 }
 0x3a4   :  { %1205 = vst.msk [vmem:[%s2393_s7 + $0xb0] sm:$0xff] %vm1182_vm1, %v1144_v10  ;;  %v1147_v63 = vadd.f32 %v1543_v62, %v2224_v23  ;;  %v1138_v0 = vpop.f32.mrb[51].mxu1 }
 0x3a5   :  { %1203 = vst.msk [vmem:[%s2393_s7 + $0xa0] sm:$0xff] %vm1182_vm1, %v1136_v11  ;;  %v1139_v28 = vadd.f32 %v2224_v23, %v1138_v0 }
 0x3a6   :  { %1206 = vst.msk [vmem:[%s2393_s7 + $0xb8] sm:$0xff] %vm1182_vm1, %v1147_v63 }
 0x3a7   :  { %1204 = vst.msk [vmem:[%s2393_s7 + $0xa8] sm:$0xff] %vm1182_vm1, %v1139_v28 }
 0x3a9   :  { %v1546_v41 = vpop.f32.mrb[52].mxu1 }
 0x3aa   :  { %v1160_v15 = vadd.f32 %v1546_v41, %v2224_v23  ;;  %v1151_v20 = vpop.f32.mrb[53].mxu1 }
 0x3ab   :  { %v1152_v22 = vadd.f32 %v2224_v23, %v1151_v20  ;;  %v1547_v24 = vpop.f32.mrb[54].mxu1 }
 0x3ac   :  { %1209 = vst.msk [vmem:[%s2393_s7 + $0xd0] sm:$0xff] %vm1182_vm1, %v1160_v15  ;;  %v1163_v21 = vadd.f32 %v1547_v24, %v2224_v23  ;;  %v1154_v19 = vpop.f32.mrb[55].mxu1 }
 0x3ad   :  { %1207 = vst.msk [vmem:[%s2393_s7 + $0xc0] sm:$0xff] %vm1182_vm1, %v1152_v22  ;;  %v1155_v60 = vadd.f32 %v2224_v23, %v1154_v19 }
 0x3ae   :  { %1210 = vst.msk [vmem:[%s2393_s7 + $0xd8] sm:$0xff] %vm1182_vm1, %v1163_v21 }
 0x3af   :  { %1208 = vst.msk [vmem:[%s2393_s7 + $0xc8] sm:$0xff] %vm1182_vm1, %v1155_v60 }
 0x3b1   :  { %v1550_v61 = vpop.f32.mrb[56].mxu1 }
 0x3b2   :  { %v1176_v36 = vadd.f32 %v1550_v61, %v2224_v23  ;;  %v1167_v32 = vpop.f32.mrb[57].mxu1 }
 0x3b3   :  { %v1168_v34 = vadd.f32 %v2224_v23, %v1167_v32  ;;  %v1551_v50 = vpop.f32.mrb[58].mxu1 }
 0x3b4   :  { %1213 = vst.msk [vmem:[%s2393_s7 + $0xf0] sm:$0xff] %vm1182_vm1, %v1176_v36  ;;  %v1179_v52 = vadd.f32 %v1551_v50, %v2224_v23  ;;  %v1170_v17 = vpop.f32.mrb[59].mxu1 }
 0x3b5   :  { %1211 = vst.msk [vmem:[%s2393_s7 + $0xe0] sm:$0xff] %vm1182_vm1, %v1168_v34  ;;  %v1171_v35 = vadd.f32 %v2224_v23, %v1170_v17 }
 0x3b6   :  { %1214 = vst.msk [vmem:[%s2393_s7 + $0xf8] sm:$0xff] %vm1182_vm1, %v1179_v52 }
 0x3b7   :  { %1212 = vst.msk [vmem:[%s2393_s7 + $0xe8] sm:$0xff] %vm1182_vm1, %v1171_v35 }

</bundles_post_ra>
